<compile_context>
chip_gen: v5e
topology: v5e:2x2
jax: 0.10.0
libtpu: 0.0.40
codegen_flags: <defaults>
</compile_context>

<pallas_src>
import jax
import jax.numpy as jnp
from jax.experimental import pallas as pl
from jax.experimental.pallas import tpu as pltpu

# config.SIZE_EXP_NODE_FEATURE (synthetic, small)
SIZE_EXP_NODE_FEATURE = 32
HIDDEN = SIZE_EXP_NODE_FEATURE // 2   # 16
LANE_TILE = 256                       # batch tile on the lane axis (multiple of 128)


def _intlize_kernel(xT_ref, w_ref, b_ref, o_ref):
    # xT_ref : [D, LANE_TILE]  (batch on lanes, features on sublanes)
    # w_ref  : [D, 1]          fused weight column (lane-broadcast)
    # b_ref  : SMEM (1,)       fused bias scalar
    # o_ref  : [1, LANE_TILE]  lane-dense row of per-vector results
    y = jnp.sum(xT_ref[...] * w_ref[...], axis=0, keepdims=True) + b_ref[0]
    # torch: max(cat([y, 1])) then min(cat([., 4]))  ==  clamp(y, 1, 4)
    o_ref[...] = jnp.minimum(jnp.maximum(y, 1.0), 4.0)


@jax.jit
def intlize_forward(action_vectors, w1, b1, w2, b2):
    """Batched IntLize forward.

    action_vectors: [B, D] float32 (each row is one action vector).
    Returns [B] float32, each entry clamped to [1, 4].
    """
    B, D = action_vectors.shape

    # --- algebraic fusion of the two Linear layers (tiny, done at trace time).
    w_eff = (w1 @ w2).astype(jnp.float32)                       # [D, 1]
    b_eff = (b1 @ w2 + b2).reshape((1,)).astype(jnp.float32)    # (1,)

    # --- pad batch up to a lane-tile multiple and put it on the lane axis
    #     (layout plumbing in the wrapper so the kernel sees lane-dense data).
    b_pad = ((B + LANE_TILE - 1) // LANE_TILE) * LANE_TILE
    if b_pad != B:
        action_vectors = jnp.pad(action_vectors, ((0, b_pad - B), (0, 0)))
    xT = action_vectors.T                                       # [D, b_pad]

    out = pl.pallas_call(
        _intlize_kernel,
        out_shape=jax.ShapeDtypeStruct((1, b_pad), jnp.float32),
        grid=(b_pad // LANE_TILE,),
        in_specs=[
            pl.BlockSpec((D, LANE_TILE), lambda i: (0, i)),       # xT tile
            pl.BlockSpec((D, 1), lambda i: (0, 0)),               # fused weights
            pl.BlockSpec(memory_space=pltpu.MemorySpace.SMEM),    # fused bias
        ],
        out_specs=pl.BlockSpec((1, LANE_TILE), lambda i: (0, i)),
        compiler_params=pltpu.CompilerParams(
            dimension_semantics=("parallel",)),
    )(xT, w_eff, b_eff)

    return out[0, :B]


def init_params(key, d=SIZE_EXP_NODE_FEATURE, h=HIDDEN):
    """Deterministic nn.Linear-style init (U[-1/sqrt(fan_in), 1/sqrt(fan_in)]).
    Weights are stored transposed ([in, out]) relative to torch's [out, in]."""
    k1, k2, k3, k4 = jax.random.split(key, 4)
    bound1 = 1.0 / (d ** 0.5)
    bound2 = 1.0 / (h ** 0.5)
    w1 = jax.random.uniform(k1, (d, h), jnp.float32, -bound1, bound1)
    b1 = jax.random.uniform(k2, (1, h), jnp.float32, -bound1, bound1)
    w2 = jax.random.uniform(k3, (h, 1), jnp.float32, -bound2, bound2)
    b2 = jax.random.uniform(k4, (1, 1), jnp.float32, -bound2, bound2)
    return w1, b1, w2, b2


if __name__ == "__main__":
    key = jax.random.PRNGKey(0)
    k_x, k_p = jax.random.split(key)

    # Batch of action vectors: [B, SIZE_EXP_NODE_FEATURE].
    B = 1024
    x = jax.random.normal(k_x, (B, SIZE_EXP_NODE_FEATURE), jnp.float32)
    w1, b1, w2, b2 = init_params(k_p)

    # NOTE: the torch branch on `left_handle.decl()` ('non_nc'/'non_nd') is
    # host-side Python string dispatch; only the taken branch is implemented.
    out = intlize_forward(x, w1, b1, w2, b2)
    out = jax.block_until_ready(out)

    # Pure-JAX reference (unfused two-layer forward + clamp).
    ref = jnp.clip((x @ w1 + b1) @ w2 + b2, 1.0, 4.0)[:, 0]
    assert out.shape == (B,)
    assert jnp.allclose(out, ref, atol=1e-4, rtol=1e-4), (out[:4], ref[:4])
    assert bool(jnp.all((out >= 1.0) & (out <= 4.0)))

    # Original module's single-vector call ([1, D] -> scalar): the wrapper
    # pads it to one lane tile internally.
    out1 = jax.block_until_ready(intlize_forward(x[:1], w1, b1, w2, b2))
    assert out1.shape == (1,)
    assert jnp.allclose(out1[0], ref[0], atol=1e-4, rtol=1e-4)

    print("KERNEL_OK")
</pallas_src>

<mosaic_0001>
module attributes {stable_mosaic.version = 11 : i64} {
  func.func @_intlize_kernel(%arg0: i32, %arg1: memref<32x256xf32, #tpu.memory_space<vmem>>, %arg2: memref<32x1xf32, #tpu.memory_space<vmem>>, %arg3: memref<1xf32, #tpu.memory_space<smem>>, %arg4: memref<1x256xf32, #tpu.memory_space<vmem>>) attributes {dimension_semantics = [#tpu.dimension_semantics<parallel>], iteration_bounds = array<i64: 4>, scalar_prefetch = 0 : i64, scratch_operands = 0 : i64, tpu.core_type = #tpu.core_type<tc>, window_params = [{transform_indices = @transform_0, window_bounds = array<i64: 32, 256>}, {pipeline_mode = #tpu.pipeline_mode<synchronous>, transform_indices = @transform_1, window_bounds = array<i64: 32, 1>}, {transform_indices = @transform_2, window_bounds = array<i64: 1>}, {transform_indices = @transform_3, window_bounds = array<i64: 1, 256>}]} {
    %c0 = arith.constant 0 : index
    %c0_0 = arith.constant 0 : index
    %0 = vector.load %arg1[%c0, %c0_0] : memref<32x256xf32, #tpu.memory_space<vmem>>, vector<32x256xf32>
    %c0_1 = arith.constant 0 : index
    %c0_2 = arith.constant 0 : index
    %1 = vector.load %arg2[%c0_1, %c0_2] : memref<32x1xf32, #tpu.memory_space<vmem>>, vector<32x1xf32>
    %2 = vector.broadcast %1 : vector<32x1xf32> to vector<32x256xf32>
    %3 = arith.mulf %0, %2 : vector<32x256xf32>
    %cst = arith.constant dense<0.000000e+00> : vector<256xf32>
    %4 = vector.multi_reduction <add>, %3, %cst [0] : vector<32x256xf32> to vector<256xf32>
    %5 = vector.shape_cast %4 : vector<256xf32> to vector<1x256xf32>
    %c0_3 = arith.constant 0 : index
    %6 = memref.load %arg3[%c0_3] : memref<1xf32, #tpu.memory_space<smem>>
    %7 = vector.broadcast %6 : f32 to vector<1x256xf32>
    %8 = arith.addf %5, %7 : vector<1x256xf32>
    %cst_4 = arith.constant 1.000000e+00 : f32
    %9 = vector.broadcast %cst_4 : f32 to vector<1x256xf32>
    %10 = arith.maximumf %8, %9 : vector<1x256xf32>
    %cst_5 = arith.constant 4.000000e+00 : f32
    %11 = vector.broadcast %cst_5 : f32 to vector<1x256xf32>
    %12 = arith.minimumf %10, %11 : vector<1x256xf32>
    %c0_6 = arith.constant 0 : index
    %c0_7 = arith.constant 0 : index
    %13 = vector.load %arg4[%c0_6, %c0_7] : memref<1x256xf32, #tpu.memory_space<vmem>>, vector<1x256xf32>
    tpu.vector_store %arg4[%c0_6, %c0_7], %12 {strides = array<i32>} : memref<1x256xf32, #tpu.memory_space<vmem>>, vector<1x256xf32>,
    return
  }
  func.func @transform_0(%arg0: i32) -> (i32, i32) {
    %c0_i32 = arith.constant 0 : i32
    %c0_i32_0 = arith.constant 0 : i32
    return %c0_i32, %arg0 : i32, i32
  }
  func.func @transform_1(%arg0: i32) -> (i32, i32) {
    %c0_i32 = arith.constant 0 : i32
    %c0_i32_0 = arith.constant 0 : i32
    %c0_i32_1 = arith.constant 0 : i32
    return %c0_i32, %c0_i32_0 : i32, i32
  }
  func.func @transform_2(%arg0: i32) -> i32 {
    %c0_i32 = arith.constant 0 : i32
    %c0_i32_0 = arith.constant 0 : i32
    return %c0_i32 : i32
  }
  func.func @transform_3(%arg0: i32) -> (i32, i32) {
    %c0_i32 = arith.constant 0 : i32
    %c0_i32_0 = arith.constant 0 : i32
    return %c0_i32, %arg0 : i32, i32
  }
}

</mosaic_0001>

<bundles_post_ra>
// kernel: intlize_forward.1
= control target key start
LH: loop header
LB: loop body
LE: loop exit
PB: predicated region body
PF: predicated region fallthrough
CT: control target
= control target key end

     0   :  { %s684_s0 = inlined_call_operand.hbm [shape: f32[32,1024], index: 0, kind: input, shape index: {}]   ;;  %s685_s1 = inlined_call_operand.vmem [shape: f32[32,1], index: 1, kind: input, shape index: {}]   ;;  %s686_s2 = inlined_call_operand.<no memory space> [shape: f32[1], index: 2, kind: input, shape index: {}]   ;;  %s687_s3 = inlined_call_operand.hbm [shape: f32[1,1024], index: 3, kind: output, shape index: {}]  }
   0x1   :  { %8 = sst [smem:[#allocation2]] %s686_s2 }
   0x2   :  { %9 = vsyncpa [#allocation4], 0 }
   0x3   :  { %11 = vsyncpa [#allocation4 + $0x1], 0 }
   0x4   :  { %12 = vsyncpa [#allocation5], 0 }
   0x5   :  { %14 = vsyncpa [#allocation5 + $0x1], 0  ;;  %s548_s14 = smov 0   ;;  %s550_s15 = smov 0  }
   0x6   :  { %s552_s16 = smov 0   ;;  %s554_s17 = smov 0  }
   0x7 LB: > { %s569_s2 = sadd.s32 4294967295, %s519_s17   ;;  %s357_s18 = sadd.s32 4294967294, %s519_s17   ;;  %s519_s17 = sphi %s554_s17, %s696_s17   ;;  %s515_s16 = sphi %s552_s16, %s695_s16   ;;  %s511_s15 = sphi %s550_s15, %s694_s15   ;;  %s507_s14 = sphi %s548_s14, %s693_s14  }
   0x8   : > { %s573_s19 = sadd.s32 1, %s519_s17   ;;  %s27_s20 = sadd.s32 1, %s515_s16 }
   0x9   : > { %s24_s21 = ssub.s32 %s519_s17, %s573_s19  ;;  %p34_p0 = scmp.ne.s32.totalorder %s515_s16, %s511_s15 }
   0xa   : > { %p25_p1 = scmp.eq.s32.totalorder %s24_s21, 0  ;;  %p35_p2 = scmp.eq.s32.totalorder %s519_s17, 0 }
   0xb   : > { %p40_p3 = scmp.ne.s32.totalorder %s511_s15, %s507_s14  ;;  %p41_p4 = scmp.eq.s32.totalorder %s569_s2, 0 }
   0xc   : > { %s585_s22 = scalar_select %p25_p1, %s515_s16, %s27_s20  }
   0xd   : > { %p587_p5 = por %p35_p2, %p34_p0  ;;  %p591_p6 = por %p41_p4, %p40_p3 }
   0xe   : > { %p106_p7 = scmp.eq.s32.totalorder %s569_s2, 3  ;;  %p112_p8 = scmp.eq.s32.totalorder %s357_s18, 3 }
   0xf   : > { %p383_p9 = scmp.lt.s32.totalorder %s519_s17, 4  ;;  %s138_s27 = sand.u32 1, %s515_s16  }
  0x10   : > { %p597_p10 = por %p106_p7, %p34_p0  ;;  %p601_p11 = por %p112_p8, %p40_p3 }
  0x11   : > { %s370_s28 = sshll.u32 %s519_s17, 4  ;;  %s360_s29 = sshll.u32 %s138_s27, 6 }
  0x12   : > { %s147_s5 = scalar_lea.hbm %s684_s0, %s370_s28  ;;  %s142_s7 = scalar_lea.vmem [#allocation3], %s360_s29 }
  0x13   : > { %s148_s6 = sshll.u32 %s147_s5, 4  ;;  %s150_s8 = sshll.u32 %s142_s7, 4  ;;  %s149_s6 = int_to_ptr.hbm [resolvable:$true] %s148_s6  ;;  %s151_s8 = int_to_ptr.vmem [resolvable:$true] %s150_s8 }
  0x14   : > { %p612_p12 = pnand %p383_p9, %p587_p5  ;;  %p363_p13 = scmp.ge.s32.totalorder %s519_s17, 1 }
  0x15   : > { %s139_s10 = scalar_lea.sflag [#allocation4], %s138_s27  ;;  %s423_s11 = sshra.s32 %s149_s6, 4  ;;  %s424_s11 = int_to_ptr.hbm [resolvable:$true] %s423_s11 }
  0x16   : > { %s425_s12 = scalar_lea.hbm %s424_s11, 64  ;;  %p427_p1 = pneg %p612_p12 }
  0x17   : > { %p426_p0 = scmp.ne.s32.totalorder %s424_s11, %s425_s12  ;;  %s430_s20 = scalar_lea.hbm %s684_s0, 256 }
  0x18   : > { %p431_p4 = scmp.lt.s32.totalorder %s424_s11, %s684_s0  ;;  %p432_p5 = scmp.lt.s32.totalorder %s430_s20, %s425_s12 }
  0x19   : > { %p428_p2 = pnand %p427_p1, %p426_p0 }
  0x1a   : > { %p433_p7 = por %p432_p5, %p431_p4 }
  0x1b   : > { %p429_p3 = pneg %p428_p2 }
  0x1d   : > { %p434_p8 = pnand %p433_p7, %p429_p3 }
  0x1f   : > { %437 = shalt.err (!%p434_p8)
}
  0x20   : > { %s521_s27 = smov 1024   ;;  %s522_s28 = smov 256  }
  0x21   : > { %s523_s29 = smov 16   ;;  %p158_p9 = scmp.lt.s32.totalorder %s519_s17, 5 }
  0x22   : > { %378 = dma.hbm_to_vmem [thread:$0]  (!%p612_p12), %s149_s6, 1024, %s151_s8, %s139_s10, %s521_s27, %s522_s28, %s523_s29  }
  0x23   : > { %p159_p0 = pnand %p363_p13, %p158_p9 }
  0x24   : > { %s631_s30 = sand.u32 (!%p159_p0), 1, %s511_s15  }
  0x25   : > { %162 = sbr.rel (%p159_p0) target bundleno = 200 (0xc8), region = 32  ;;  %s364_s4 = sshll.u32 (!%p159_p0), %s631_s30, 6 }
  0x26   : > { %s165_s5 = scalar_lea.sflag (!%p159_p0), [#allocation4], %s631_s30  ;;  %s168_s7 = scalar_lea.vmem (!%p159_p0), [#allocation3], %s364_s4 }
  0x2a   : > { %498 = dma.done.wait (%p591_p6), %s165_s5, 1024  }
  0x2b   : > { %500 = vsyncadd (%p591_p6), %s165_s5, 4294966272  ;;  %v524_v0 = vmov 0   ;;  %v204_v1 = vld [vmem:[%s685_s1 + $0x10] sm:$0xff]  ;;  %v202_v2 = vld [vmem:[%s685_s1] sm:$0xff]  ;;  %s252_s18 = sld [smem:[#allocation2]]  ;;  %s365_s20 = sshll.u32 %s631_s30, 1  ;;  %v266_v48 = vlaneseq }
  0x2c   : > { %422 = vset.pattern.permute.xlu1 %v524_v0  ;;  %421 = vset.pattern.permute.xlu0 %v524_v0  ;;  %v205_v3 = vld [vmem:[%s685_s1 + $0x18] sm:$0xff]  ;;  %v203_v4 = vld [vmem:[%s685_s1 + $0x8] sm:$0xff]  ;;  %v194_v7 = vld [vmem:[%s168_s7] sm:$0xff]  ;;  %s367_s21 = sshll.u32 %s569_s2, 1  ;;  %s191_s29 = scalar_lea.vmem [#allocation6], %s365_s20  ;;  %vm263_vm0 = vcmask 1040384  }
  0x2d   : > { %218 = vperm.xlu1 %422, %v204_v1   ;;  %208 = vperm.xlu0 %421, %v202_v2   ;;  %v195_v8 = vld [vmem:[%s168_s7 + $0x8] sm:$0xff]  ;;  %v196_v9 = vld [vmem:[%s168_s7 + $0x10] sm:$0xff]  ;;  %v197_v10 = vld [vmem:[%s168_s7 + $0x18] sm:$0xff]  ;;  %s282_s28 = scalar_lea.hbm %s687_s3, %s367_s21  ;;  %s284_s4 = sshll.u32 %s191_s29, 4  ;;  %vm268_vm1 = vcmp.lt.s32.totalorder %v266_v48, 256  ;;  %s285_s4 = int_to_ptr.vmem [resolvable:$true] %s284_s4 }
  0x2e   : > { %v198_v11 = vld [vmem:[%s168_s7 + $0x20] sm:$0xff]  ;;  %v199_v12 = vld [vmem:[%s168_s7 + $0x28] sm:$0xff]  ;;  %v200_v19 = vld [vmem:[%s168_s7 + $0x30] sm:$0xff]  ;;  %s286_s5 = sshll.u32 %s282_s28, 4  ;;  %s272_s2 = scalar_lea.sflag [#allocation5], %s631_s30  ;;  %s287_s5 = int_to_ptr.hbm [resolvable:$true] %s286_s5 }
  0x2f   : > { %v201_v20 = vld [vmem:[%s168_s7 + $0x38] sm:$0xff]  ;;  %s467_s7 = sshra.s32 %s287_s5, 4  ;;  %s473_s10 = scalar_lea.hbm %s687_s3, 8  ;;  %s468_s7 = int_to_ptr.hbm [resolvable:$true] %s467_s7 }
  0x30   : > { %s469_s6 = scalar_lea.hbm %s468_s7, 2  ;;  %p474_p1 = scmp.lt.s32.totalorder %s468_s7, %s687_s3 }
  0x31   : > { %v253_v41 = vstv %s252_s18  ;;  %p470_p6 = scmp.ne.s32.totalorder %s468_s7, %s469_s6  ;;  %p475_p2 = scmp.lt.s32.totalorder %s473_s10, %s469_s6 }
  0x33   : > { %p471_p12 = pnand %p470_p6, %p597_p10  ;;  %p476_p3 = por %p475_p2, %p474_p1 }
  0x35   : > { %223 = vperm.xlu1 %422, %v205_v3   ;;  %213 = vperm.xlu0 %421, %v203_v4   ;;  %p472_p13 = pneg %p471_p12 }
  0x37   : > { %p477_p4 = pnand %p476_p3, %p472_p13 }
  0x9f   : > { %v219_v5 = vpop.permute.xlu1 %218  ;;  %v209_v6 = vpop.permute.xlu0 %208 }
  0xa0   : > { %v226_v14 = vmul.f32 %v209_v6, %v194_v7  ;;  %v227_v15 = vmul.f32 %v209_v6, %v195_v8  ;;  %v230_v21 = vmul.f32 %v219_v5, %v198_v11  ;;  %v231_v22 = vmul.f32 %v219_v5, %v199_v12 }
  0xa7   : > { %v214_v13 = vpop.permute.xlu0 %213  ;;  %v224_v18 = vpop.permute.xlu1 %223 }
  0xa8   : > { %v228_v16 = vmul.f32 %v214_v13, %v196_v9  ;;  %v229_v17 = vmul.f32 %v214_v13, %v197_v10  ;;  %v232_v25 = vmul.f32 %v224_v18, %v200_v19  ;;  %v233_v26 = vmul.f32 %v224_v18, %v201_v20 }
  0xaa   : > { %v234_v23 = vadd.f32 %v228_v16, %v226_v14  ;;  %v243_v24 = vadd.f32 %v229_v17, %v227_v15 }
  0xac   : > { %v235_v27 = vadd.f32 %v234_v23, %v230_v21  ;;  %v244_v28 = vadd.f32 %v243_v24, %v231_v22 }
  0xae   : > { %v236_v29 = vadd.f32 %v235_v27, %v232_v25  ;;  %v245_v30 = vadd.f32 %v244_v28, %v233_v26 }
  0xb0   : > { %v237_v31 = vrot.slane %v236_v29, 4  ;;  %v246_v32 = vrot.slane %v245_v30, 4 }
  0xb2   : > { %v238_v33 = vadd.f32 %v237_v31, %v236_v29  ;;  %v247_v34 = vadd.f32 %v246_v32, %v245_v30 }
  0xb4   : > { %v239_v35 = vrot.slane %v238_v33, 2  ;;  %v248_v36 = vrot.slane %v247_v34, 2 }
  0xb6   : > { %v240_v37 = vadd.f32 %v239_v35, %v238_v33  ;;  %v249_v38 = vadd.f32 %v248_v36, %v247_v34 }
  0xb8   : > { %v241_v39 = vrot.slane %v240_v37, 1  ;;  %v250_v40 = vrot.slane %v249_v38, 1 }
  0xba   : > { %v242_v42 = vadd.f32 %v241_v39, %v240_v37  ;;  %v251_v43 = vadd.f32 %v250_v40, %v249_v38 }
  0xbc   : > { %v254_v44 = vadd.f32 %v253_v41, %v242_v42  ;;  %v255_v45 = vadd.f32 %v253_v41, %v251_v43 }
  0xbe   : > { %v257_v46 = vmax.f32 %v255_v45, 1.0  ;;  %v256_v47 = vmax.f32 %v254_v44, 1.0 }
  0xc0   : > { %v259_v49 = vmin.f32 %v257_v46, 4.0  ;;  %v258_v50 = vmin.f32 %v256_v47, 4.0 }
  0xc2   : > { %v262_v51 = vrot.slane %v259_v49, 7 }
  0xc4   : > { %v264_v52 = vsel %vm263_vm0, %v258_v50, %v262_v51 }
  0xc5   : > { %270 = vst.msk [vmem:[%s191_s29] sm:$0x3] %vm268_vm1, %v264_v52 }
  0xc6   : > { %480 = shalt.err (!%p477_p4)
}
  0xc7   : > { %373 = dma.vmem_to_hbm [thread:$0]  (%p597_p10), %s285_s4, 32, %s287_s5, %s272_s2  }
  0xc8 PF: > { %p384_p5 = scmp.ge.s32.totalorder %s519_s17, 2  ;;  %s298_s30 = sand.u32 1, %s507_s14  }
  0xc9   : > { %s299_s13 = scalar_lea.sflag [#allocation5], %s298_s30 }
  0xca   : > { %p380_p7 = pnand %p384_p5, %p601_p11 }
  0xcc   : > { %p381_p8 = pneg %p380_p7 }
  0xce   : > { %502 = dma.done.wait (%p381_p8), %s299_s13, 32  }
  0xcf   : > { %504 = vsyncadd (%p381_p8), %s299_s13, 4294967264  ;;  %p17_p9 = scmp.ge.s32.totalorder %s573_s19, 6   ;;  %s693_s14 = smov %s511_s15 }
  0xd0   : > { %s694_s15 = smov %s515_s16  ;;  %s695_s16 = smov %s585_s22 }
  0xd1   : > { %s696_s17 = smov %s573_s19  ;;  %19 = sbr.rel (!%p17_p9) target bundleno = 7 (0x7), region = 77 }
  0xd6   :  { %305 = vsyncpa [#allocation4], 1 }
  0xd7   :  { %307 = vsyncpa [#allocation4 + $0x1], 1 }
  0xd8   :  { %308 = vsyncpa [#allocation5], 1 }
  0xd9   :  { %310 = vsyncpa [#allocation5 + $0x1], 1 }

</bundles_post_ra>
